<compile_context>
chip_gen: v7x
topology: tpu7x:2x2x1
jax: 0.10.0
libtpu: 0.0.40
codegen_flags: <defaults>
</compile_context>

<pallas_src>
import functools
import numpy as np
import jax
import jax.numpy as jnp
from jax.experimental import pallas as pl
from jax.experimental.pallas import tpu as pltpu


def _build_tap_masks(h, w):
    """masks[k, p] == 1.0 iff the source pixel (ph+dh, pw+dw) is inside the
    image for output pixel p = ph*w + pw and tap k = (dh+1)*3 + (dw+1)."""
    p_tot = h * w
    m = np.zeros((9, p_tot), np.float32)
    for kh in range(3):
        for kw in range(3):
            k = kh * 3 + kw
            dh, dw = kh - 1, kw - 1
            for ph in range(h):
                if not (0 <= ph + dh < h):
                    continue
                for pw in range(w):
                    if 0 <= pw + dw < w:
                        m[k, ph * w + pw] = 1.0
    return jnp.asarray(m)


def _fused_two_conv_relu_kernel(x_ref, m_ref, w1_ref, b1_ref, w2_ref, b2_ref,
                                o_ref, stk1_ref, stk2_ref, *, img_w):
    """One grid step = a block of images concatenated along the lane axis.
    x_ref : (Cin, L)       lane-dense activations, L = n_blk * H*W
    m_ref : (9, L)         per-tap 0/1 boundary masks (image-periodic)
    w*_ref: (Cout, 9*Cin)  tap-fused weights, column = (kh*3+kw)*Cin + c
    b*_ref: (Cout, 1)
    o_ref : (C2, L)
    stk*  : VMEM scratch holding the 9 shifted/masked activations stacked on K.
    """
    lanes = x_ref.shape[-1]

    def conv3x3_relu(a, w_ref, b_ref, stk_ref):
        ci = a.shape[0]
        for kh in range(3):
            for kw in range(3):
                k = kh * 3 + kw
                s = (kh - 1) * img_w + (kw - 1)   # source-pixel offset of this tap
                if s == 0:
                    patch = a                     # centre tap: always in bounds
                else:
                    # patch[:, q] = a[:, q + s], zeroed where the source pixel
                    # falls outside the image (mask also kills cross-image wrap).
                    rolled = pltpu.roll(a, shift=(-s) % lanes, axis=1)
                    patch = rolled * m_ref[pl.ds(k, 1), :]
                stk_ref[pl.ds(k * ci, ci), :] = patch
        # Single MXU matmul per conv: (Cout, 9*Cin) x (9*Cin, L).
        y = jnp.dot(w_ref[...], stk_ref[...], preferred_element_type=jnp.float32)
        return jnp.maximum(y + b_ref[...], 0.0)

    x = x_ref[...].astype(jnp.float32)                  # (Cin, L)
    y1 = conv3x3_relu(x, w1_ref, b1_ref, stk1_ref)      # (C1, L) stays on-chip
    y2 = conv3x3_relu(y1, w2_ref, b2_ref, stk2_ref)     # (C2, L)
    o_ref[...] = y2.astype(o_ref.dtype)


class FeatureExtractorPallas:
    """Pallas port of FeatureExtractor(model) keeping children[:-2]:
    conv1(4->8, 3x3, pad 1) -> ReLU -> conv2(8->16, 3x3, pad 1) -> ReLU.
    Accepts NCHW, returns NCHW."""

    def __init__(self, key, cin=4, c1=8, c2=16, k=3, h=16, w=16):
        k1, k2, k3, k4 = jax.random.split(key, 4)
        s1 = 1.0 / (cin * k * k) ** 0.5  # PyTorch Conv2d default uniform bound
        s2 = 1.0 / (c1 * k * k) ** 0.5
        self.w1 = jax.random.uniform(k1, (c1, cin, k, k), jnp.float32, -s1, s1)
        self.b1 = jax.random.uniform(k2, (c1,), jnp.float32, -s1, s1)
        self.w2 = jax.random.uniform(k3, (c2, c1, k, k), jnp.float32, -s2, s2)
        self.b2 = jax.random.uniform(k4, (c2,), jnp.float32, -s2, s2)

        self.cin, self.c1, self.c2 = cin, c1, c2
        self.h, self.w = h, w
        # One-time host prep: tap-fused weights (col = (kh*3+kw)*Cin + c) and
        # O(P) boundary masks -- no O(P^2) shift matrices.
        self.w1f = jnp.transpose(self.w1, (0, 2, 3, 1)).reshape(c1, 9 * cin)
        self.w2f = jnp.transpose(self.w2, (0, 2, 3, 1)).reshape(c2, 9 * c1)
        self.b1_col = self.b1.reshape(c1, 1)
        self.b2_col = self.b2.reshape(c2, 1)
        self.tap_masks = _build_tap_masks(h, w)          # (9, P) ~ 9 KB

    def __call__(self, x_nchw):
        n, cin, h, w = x_nchw.shape
        assert (cin, h, w) == (self.cin, self.h, self.w), (cin, h, w)
        p = h * w
        c1, c2 = self.c1, self.c2

        # Batch blocking: keep >=2 "parallel" grid steps when n>=2 (v7x has two
        # TensorCores) while batching several images into the lane dim per step.
        bn = max(1, min(16, -(-n // 2))) if n > 1 else 1
        n_pad = -(-n // bn) * bn
        if n_pad != n:
            x_nchw = jnp.pad(x_nchw, ((0, n_pad - n), (0, 0), (0, 0), (0, 0)))

        # (N, Cin, H, W) -> (Cin, N*P): a tiny (~8 KB) layout shuffle so the
        # kernel sees lane-dense operands with images concatenated along lanes.
        x2d = jnp.transpose(x_nchw.reshape(n_pad, cin, p),
                            (1, 0, 2)).reshape(cin, n_pad * p)
        lanes = bn * p
        masks = jnp.tile(self.tap_masks, (1, bn))        # (9, bn*P)

        kernel = functools.partial(_fused_two_conv_relu_kernel, img_w=w)

        out2d = pl.pallas_call(
            kernel,
            out_shape=jax.ShapeDtypeStruct((c2, n_pad * p), x_nchw.dtype),
            grid=(n_pad // bn,),
            in_specs=[
                pl.BlockSpec((cin, lanes), lambda i: (0, i)),
                pl.BlockSpec((9, lanes), lambda i: (0, 0)),     # resident masks
                pl.BlockSpec((c1, 9 * cin), lambda i: (0, 0)),  # resident weights
                pl.BlockSpec((c1, 1), lambda i: (0, 0)),
                pl.BlockSpec((c2, 9 * c1), lambda i: (0, 0)),
                pl.BlockSpec((c2, 1), lambda i: (0, 0)),
            ],
            out_specs=pl.BlockSpec((c2, lanes), lambda i: (0, i)),
            scratch_shapes=[
                pltpu.VMEM((9 * cin, lanes), jnp.float32),
                pltpu.VMEM((9 * c1, lanes), jnp.float32),
            ],
            compiler_params=pltpu.CompilerParams(
                dimension_semantics=("parallel",)),
        )(x2d, masks, self.w1f, self.b1_col, self.w2f, self.b2_col)

        out = jnp.transpose(out2d.reshape(c2, n_pad, h, w), (1, 0, 2, 3))[:n]
        # TODO(synk): the original forward() prints the feature-map shape;
        # omitted to keep stdout to exactly "KERNEL_OK".
        return out


def _reference(x_nchw, fe):
    def conv(x, w, b):
        y = jax.lax.conv_general_dilated(
            x, w, (1, 1), ((1, 1), (1, 1)),
            dimension_numbers=("NCHW", "OIHW", "NCHW"))
        return jnp.maximum(y + b[None, :, None, None], 0.0)
    return conv(conv(x_nchw, fe.w1, fe.b1), fe.w2, fe.b2)


if __name__ == "__main__":
    key = jax.random.PRNGKey(0)
    kx, kp = jax.random.split(key)
    x = jax.random.normal(kx, (2, 4, 16, 16), jnp.float32)  # NCHW like PyTorch
    fe = FeatureExtractorPallas(kp)

    out = jax.block_until_ready(fe(x))
    ref = _reference(x, fe)

    assert out.shape == (2, 16, 16, 16), out.shape
    assert jnp.allclose(out, ref, atol=1e-4, rtol=1e-4), float(jnp.max(jnp.abs(out - ref)))
    print("KERNEL_OK")
</pallas_src>

<mosaic_0001>
module attributes {stable_mosaic.version = 11 : i64} {
  func.func @_fused_two_conv_relu_kernel(%arg0: i32, %arg1: memref<4x256xf32, #tpu.memory_space<vmem>>, %arg2: memref<9x256xf32, #tpu.memory_space<vmem>>, %arg3: memref<8x36xf32, #tpu.memory_space<vmem>>, %arg4: memref<8x1xf32, #tpu.memory_space<vmem>>, %arg5: memref<16x72xf32, #tpu.memory_space<vmem>>, %arg6: memref<16x1xf32, #tpu.memory_space<vmem>>, %arg7: memref<16x256xf32, #tpu.memory_space<vmem>>, %arg8: memref<36x256xf32, #tpu.memory_space<vmem>>, %arg9: memref<72x256xf32, #tpu.memory_space<vmem>>) attributes {dimension_semantics = [#tpu.dimension_semantics<parallel>], iteration_bounds = array<i64: 2>, scalar_prefetch = 0 : i64, scratch_operands = 2 : i64, tpu.core_type = #tpu.core_type<tc>, window_params = [{transform_indices = @transform_0, window_bounds = array<i64: 4, 256>}, {pipeline_mode = #tpu.pipeline_mode<synchronous>, transform_indices = @transform_1, window_bounds = array<i64: 9, 256>}, {pipeline_mode = #tpu.pipeline_mode<synchronous>, transform_indices = @transform_2, window_bounds = array<i64: 8, 36>}, {pipeline_mode = #tpu.pipeline_mode<synchronous>, transform_indices = @transform_3, window_bounds = array<i64: 8, 1>}, {pipeline_mode = #tpu.pipeline_mode<synchronous>, transform_indices = @transform_4, window_bounds = array<i64: 16, 72>}, {pipeline_mode = #tpu.pipeline_mode<synchronous>, transform_indices = @transform_5, window_bounds = array<i64: 16, 1>}, {transform_indices = @transform_6, window_bounds = array<i64: 16, 256>}]} {
    %c0 = arith.constant 0 : index
    %c0_0 = arith.constant 0 : index
    %0 = vector.load %arg1[%c0, %c0_0] : memref<4x256xf32, #tpu.memory_space<vmem>>, vector<4x256xf32>
    %c17_i32 = arith.constant 17 : i32
    %1 = tpu.dynamic_rotate %0 by %c17_i32 dim 1 : vector<4x256xf32>, i32 -> vector<4x256xf32>
    %c0_1 = arith.constant 0 : index
    %c0_2 = arith.constant 0 : index
    %2 = vector.load %arg2[%c0_1, %c0_2] : memref<9x256xf32, #tpu.memory_space<vmem>>, vector<1x256xf32>
    %3 = vector.broadcast %2 : vector<1x256xf32> to vector<4x256xf32>
    %4 = arith.mulf %1, %3 : vector<4x256xf32>
    %c0_3 = arith.constant 0 : index
    %c0_4 = arith.constant 0 : index
    %5 = vector.load %arg8[%c0_3, %c0_4] : memref<36x256xf32, #tpu.memory_space<vmem>>, vector<4x256xf32>
    tpu.vector_store %arg8[%c0_3, %c0_4], %4 {strides = array<i32>} : memref<36x256xf32, #tpu.memory_space<vmem>>, vector<4x256xf32>,
    %c16_i32 = arith.constant 16 : i32
    %6 = tpu.dynamic_rotate %0 by %c16_i32 dim 1 : vector<4x256xf32>, i32 -> vector<4x256xf32>
    %c1 = arith.constant 1 : index
    %c0_5 = arith.constant 0 : index
    %7 = vector.load %arg2[%c1, %c0_5] : memref<9x256xf32, #tpu.memory_space<vmem>>, vector<1x256xf32>
    %8 = vector.broadcast %7 : vector<1x256xf32> to vector<4x256xf32>
    %9 = arith.mulf %6, %8 : vector<4x256xf32>
    %c4 = arith.constant 4 : index
    %c0_6 = arith.constant 0 : index
    %10 = vector.load %arg8[%c4, %c0_6] : memref<36x256xf32, #tpu.memory_space<vmem>>, vector<4x256xf32>
    tpu.vector_store %arg8[%c4, %c0_6], %9 {strides = array<i32>} : memref<36x256xf32, #tpu.memory_space<vmem>>, vector<4x256xf32>,
    %c15_i32 = arith.constant 15 : i32
    %11 = tpu.dynamic_rotate %0 by %c15_i32 dim 1 : vector<4x256xf32>, i32 -> vector<4x256xf32>
    %c2 = arith.constant 2 : index
    %c0_7 = arith.constant 0 : index
    %12 = vector.load %arg2[%c2, %c0_7] : memref<9x256xf32, #tpu.memory_space<vmem>>, vector<1x256xf32>
    %13 = vector.broadcast %12 : vector<1x256xf32> to vector<4x256xf32>
    %14 = arith.mulf %11, %13 : vector<4x256xf32>
    %c8 = arith.constant 8 : index
    %c0_8 = arith.constant 0 : index
    %15 = vector.load %arg8[%c8, %c0_8] : memref<36x256xf32, #tpu.memory_space<vmem>>, vector<4x256xf32>
    tpu.vector_store %arg8[%c8, %c0_8], %14 {strides = array<i32>} : memref<36x256xf32, #tpu.memory_space<vmem>>, vector<4x256xf32>,
    %c1_i32 = arith.constant 1 : i32
    %16 = tpu.dynamic_rotate %0 by %c1_i32 dim 1 : vector<4x256xf32>, i32 -> vector<4x256xf32>
    %c3 = arith.constant 3 : index
    %c0_9 = arith.constant 0 : index
    %17 = vector.load %arg2[%c3, %c0_9] : memref<9x256xf32, #tpu.memory_space<vmem>>, vector<1x256xf32>
    %18 = vector.broadcast %17 : vector<1x256xf32> to vector<4x256xf32>
    %19 = arith.mulf %16, %18 : vector<4x256xf32>
    %c12 = arith.constant 12 : index
    %c0_10 = arith.constant 0 : index
    %20 = vector.load %arg8[%c12, %c0_10] : memref<36x256xf32, #tpu.memory_space<vmem>>, vector<4x256xf32>
    tpu.vector_store %arg8[%c12, %c0_10], %19 {strides = array<i32>} : memref<36x256xf32, #tpu.memory_space<vmem>>, vector<4x256xf32>,
    %c16 = arith.constant 16 : index
    %c0_11 = arith.constant 0 : index
    %21 = vector.load %arg8[%c16, %c0_11] : memref<36x256xf32, #tpu.memory_space<vmem>>, vector<4x256xf32>
    tpu.vector_store %arg8[%c16, %c0_11], %0 {strides = array<i32>} : memref<36x256xf32, #tpu.memory_space<vmem>>, vector<4x256xf32>,
    %c255_i32 = arith.constant 255 : i32
    %22 = tpu.dynamic_rotate %0 by %c255_i32 dim 1 : vector<4x256xf32>, i32 -> vector<4x256xf32>
    %c5 = arith.constant 5 : index
    %c0_12 = arith.constant 0 : index
    %23 = vector.load %arg2[%c5, %c0_12] : memref<9x256xf32, #tpu.memory_space<vmem>>, vector<1x256xf32>
    %24 = vector.broadcast %23 : vector<1x256xf32> to vector<4x256xf32>
    %25 = arith.mulf %22, %24 : vector<4x256xf32>
    %c20 = arith.constant 20 : index
    %c0_13 = arith.constant 0 : index
    %26 = vector.load %arg8[%c20, %c0_13] : memref<36x256xf32, #tpu.memory_space<vmem>>, vector<4x256xf32>
    tpu.vector_store %arg8[%c20, %c0_13], %25 {strides = array<i32>} : memref<36x256xf32, #tpu.memory_space<vmem>>, vector<4x256xf32>,
    %c241_i32 = arith.constant 241 : i32
    %27 = tpu.dynamic_rotate %0 by %c241_i32 dim 1 : vector<4x256xf32>, i32 -> vector<4x256xf32>
    %c6 = arith.constant 6 : index
    %c0_14 = arith.constant 0 : index
    %28 = vector.load %arg2[%c6, %c0_14] : memref<9x256xf32, #tpu.memory_space<vmem>>, vector<1x256xf32>
    %29 = vector.broadcast %28 : vector<1x256xf32> to vector<4x256xf32>
    %30 = arith.mulf %27, %29 : vector<4x256xf32>
    %c24 = arith.constant 24 : index
    %c0_15 = arith.constant 0 : index
    %31 = vector.load %arg8[%c24, %c0_15] : memref<36x256xf32, #tpu.memory_space<vmem>>, vector<4x256xf32>
    tpu.vector_store %arg8[%c24, %c0_15], %30 {strides = array<i32>} : memref<36x256xf32, #tpu.memory_space<vmem>>, vector<4x256xf32>,
    %c240_i32 = arith.constant 240 : i32
    %32 = tpu.dynamic_rotate %0 by %c240_i32 dim 1 : vector<4x256xf32>, i32 -> vector<4x256xf32>
    %c7 = arith.constant 7 : index
    %c0_16 = arith.constant 0 : index
    %33 = vector.load %arg2[%c7, %c0_16] : memref<9x256xf32, #tpu.memory_space<vmem>>, vector<1x256xf32>
    %34 = vector.broadcast %33 : vector<1x256xf32> to vector<4x256xf32>
    %35 = arith.mulf %32, %34 : vector<4x256xf32>
    %c28 = arith.constant 28 : index
    %c0_17 = arith.constant 0 : index
    %36 = vector.load %arg8[%c28, %c0_17] : memref<36x256xf32, #tpu.memory_space<vmem>>, vector<4x256xf32>
    tpu.vector_store %arg8[%c28, %c0_17], %35 {strides = array<i32>} : memref<36x256xf32, #tpu.memory_space<vmem>>, vector<4x256xf32>,
    %c239_i32 = arith.constant 239 : i32
    %37 = tpu.dynamic_rotate %0 by %c239_i32 dim 1 : vector<4x256xf32>, i32 -> vector<4x256xf32>
    %c8_18 = arith.constant 8 : index
    %c0_19 = arith.constant 0 : index
    %38 = vector.load %arg2[%c8_18, %c0_19] : memref<9x256xf32, #tpu.memory_space<vmem>>, vector<1x256xf32>
    %39 = vector.broadcast %38 : vector<1x256xf32> to vector<4x256xf32>
    %40 = arith.mulf %37, %39 : vector<4x256xf32>
    %c32 = arith.constant 32 : index
    %c0_20 = arith.constant 0 : index
    %41 = vector.load %arg8[%c32, %c0_20] : memref<36x256xf32, #tpu.memory_space<vmem>>, vector<4x256xf32>
    tpu.vector_store %arg8[%c32, %c0_20], %40 {strides = array<i32>} : memref<36x256xf32, #tpu.memory_space<vmem>>, vector<4x256xf32>,
    %c0_21 = arith.constant 0 : index
    %c0_22 = arith.constant 0 : index
    %42 = vector.load %arg3[%c0_21, %c0_22] : memref<8x36xf32, #tpu.memory_space<vmem>>, vector<8x36xf32>
    %c0_23 = arith.constant 0 : index
    %c0_24 = arith.constant 0 : index
    %43 = vector.load %arg8[%c0_23, %c0_24] : memref<36x256xf32, #tpu.memory_space<vmem>>, vector<36x256xf32>
    %cst = arith.constant dense<0.000000e+00> : vector<8x256xf32>
    %44 = tpu.matmul %42, %43, %cst {dimension_numbers = #tpu.dot_dimension_numbers<[1], [0], [0], [1], [0, 0, 1, 1], [], []>} : vector<8x36xf32>, vector<36x256xf32>, vector<8x256xf32> -> vector<8x256xf32>
    %c0_25 = arith.constant 0 : index
    %c0_26 = arith.constant 0 : index
    %45 = vector.load %arg4[%c0_25, %c0_26] : memref<8x1xf32, #tpu.memory_space<vmem>>, vector<8x1xf32>
    %46 = vector.broadcast %45 : vector<8x1xf32> to vector<8x256xf32>
    %47 = arith.addf %44, %46 : vector<8x256xf32>
    %cst_27 = arith.constant 0.000000e+00 : f32
    %48 = vector.broadcast %cst_27 : f32 to vector<8x256xf32>
    %49 = arith.maximumf %47, %48 : vector<8x256xf32>
    %c17_i32_28 = arith.constant 17 : i32
    %50 = tpu.dynamic_rotate %49 by %c17_i32_28 dim 1 : vector<8x256xf32>, i32 -> vector<8x256xf32>
    %c0_29 = arith.constant 0 : index
    %c0_30 = arith.constant 0 : index
    %51 = vector.load %arg2[%c0_29, %c0_30] : memref<9x256xf32, #tpu.memory_space<vmem>>, vector<1x256xf32>
    %52 = vector.broadcast %51 : vector<1x256xf32> to vector<8x256xf32>
    %53 = arith.mulf %50, %52 : vector<8x256xf32>
    %c0_31 = arith.constant 0 : index
    %c0_32 = arith.constant 0 : index
    %54 = vector.load %arg9[%c0_31, %c0_32] : memref<72x256xf32, #tpu.memory_space<vmem>>, vector<8x256xf32>
    tpu.vector_store %arg9[%c0_31, %c0_32], %53 {strides = array<i32>} : memref<72x256xf32, #tpu.memory_space<vmem>>, vector<8x256xf32>,
    %c16_i32_33 = arith.constant 16 : i32
    %55 = tpu.dynamic_rotate %49 by %c16_i32_33 dim 1 : vector<8x256xf32>, i32 -> vector<8x256xf32>
    %c1_34 = arith.constant 1 : index
    %c0_35 = arith.constant 0 : index
    %56 = vector.load %arg2[%c1_34, %c0_35] : memref<9x256xf32, #tpu.memory_space<vmem>>, vector<1x256xf32>
    %57 = vector.broadcast %56 : vector<1x256xf32> to vector<8x256xf32>
    %58 = arith.mulf %55, %57 : vector<8x256xf32>
    %c8_36 = arith.constant 8 : index
    %c0_37 = arith.constant 0 : index
    %59 = vector.load %arg9[%c8_36, %c0_37] : memref<72x256xf32, #tpu.memory_space<vmem>>, vector<8x256xf32>
    tpu.vector_store %arg9[%c8_36, %c0_37], %58 {strides = array<i32>} : memref<72x256xf32, #tpu.memory_space<vmem>>, vector<8x256xf32>,
    %c15_i32_38 = arith.constant 15 : i32
    %60 = tpu.dynamic_rotate %49 by %c15_i32_38 dim 1 : vector<8x256xf32>, i32 -> vector<8x256xf32>
    %c2_39 = arith.constant 2 : index
    %c0_40 = arith.constant 0 : index
    %61 = vector.load %arg2[%c2_39, %c0_40] : memref<9x256xf32, #tpu.memory_space<vmem>>, vector<1x256xf32>
    %62 = vector.broadcast %61 : vector<1x256xf32> to vector<8x256xf32>
    %63 = arith.mulf %60, %62 : vector<8x256xf32>
    %c16_41 = arith.constant 16 : index
    %c0_42 = arith.constant 0 : index
    %64 = vector.load %arg9[%c16_41, %c0_42] : memref<72x256xf32, #tpu.memory_space<vmem>>, vector<8x256xf32>
    tpu.vector_store %arg9[%c16_41, %c0_42], %63 {strides = array<i32>} : memref<72x256xf32, #tpu.memory_space<vmem>>, vector<8x256xf32>,
    %c1_i32_43 = arith.constant 1 : i32
    %65 = tpu.dynamic_rotate %49 by %c1_i32_43 dim 1 : vector<8x256xf32>, i32 -> vector<8x256xf32>
    %c3_44 = arith.constant 3 : index
    %c0_45 = arith.constant 0 : index
    %66 = vector.load %arg2[%c3_44, %c0_45] : memref<9x256xf32, #tpu.memory_space<vmem>>, vector<1x256xf32>
    %67 = vector.broadcast %66 : vector<1x256xf32> to vector<8x256xf32>
    %68 = arith.mulf %65, %67 : vector<8x256xf32>
    %c24_46 = arith.constant 24 : index
    %c0_47 = arith.constant 0 : index
    %69 = vector.load %arg9[%c24_46, %c0_47] : memref<72x256xf32, #tpu.memory_space<vmem>>, vector<8x256xf32>
    tpu.vector_store %arg9[%c24_46, %c0_47], %68 {strides = array<i32>} : memref<72x256xf32, #tpu.memory_space<vmem>>, vector<8x256xf32>,
    %c32_48 = arith.constant 32 : index
    %c0_49 = arith.constant 0 : index
    %70 = vector.load %arg9[%c32_48, %c0_49] : memref<72x256xf32, #tpu.memory_space<vmem>>, vector<8x256xf32>
    tpu.vector_store %arg9[%c32_48, %c0_49], %49 {strides = array<i32>} : memref<72x256xf32, #tpu.memory_space<vmem>>, vector<8x256xf32>,
    %c255_i32_50 = arith.constant 255 : i32
    %71 = tpu.dynamic_rotate %49 by %c255_i32_50 dim 1 : vector<8x256xf32>, i32 -> vector<8x256xf32>
    %c5_51 = arith.constant 5 : index
    %c0_52 = arith.constant 0 : index
    %72 = vector.load %arg2[%c5_51, %c0_52] : memref<9x256xf32, #tpu.memory_space<vmem>>, vector<1x256xf32>
    %73 = vector.broadcast %72 : vector<1x256xf32> to vector<8x256xf32>
    %74 = arith.mulf %71, %73 : vector<8x256xf32>
    %c40 = arith.constant 40 : index
    %c0_53 = arith.constant 0 : index
    %75 = vector.load %arg9[%c40, %c0_53] : memref<72x256xf32, #tpu.memory_space<vmem>>, vector<8x256xf32>
    tpu.vector_store %arg9[%c40, %c0_53], %74 {strides = array<i32>} : memref<72x256xf32, #tpu.memory_space<vmem>>, vector<8x256xf32>,
    %c241_i32_54 = arith.constant 241 : i32
    %76 = tpu.dynamic_rotate %49 by %c241_i32_54 dim 1 : vector<8x256xf32>, i32 -> vector<8x256xf32>
    %c6_55 = arith.constant 6 : index
    %c0_56 = arith.constant 0 : index
    %77 = vector.load %arg2[%c6_55, %c0_56] : memref<9x256xf32, #tpu.memory_space<vmem>>, vector<1x256xf32>
    %78 = vector.broadcast %77 : vector<1x256xf32> to vector<8x256xf32>
    %79 = arith.mulf %76, %78 : vector<8x256xf32>
    %c48 = arith.constant 48 : index
    %c0_57 = arith.constant 0 : index
    %80 = vector.load %arg9[%c48, %c0_57] : memref<72x256xf32, #tpu.memory_space<vmem>>, vector<8x256xf32>
    tpu.vector_store %arg9[%c48, %c0_57], %79 {strides = array<i32>} : memref<72x256xf32, #tpu.memory_space<vmem>>, vector<8x256xf32>,
    %c240_i32_58 = arith.constant 240 : i32
    %81 = tpu.dynamic_rotate %49 by %c240_i32_58 dim 1 : vector<8x256xf32>, i32 -> vector<8x256xf32>
    %c7_59 = arith.constant 7 : index
    %c0_60 = arith.constant 0 : index
    %82 = vector.load %arg2[%c7_59, %c0_60] : memref<9x256xf32, #tpu.memory_space<vmem>>, vector<1x256xf32>
    %83 = vector.broadcast %82 : vector<1x256xf32> to vector<8x256xf32>
    %84 = arith.mulf %81, %83 : vector<8x256xf32>
    %c56 = arith.constant 56 : index
    %c0_61 = arith.constant 0 : index
    %85 = vector.load %arg9[%c56, %c0_61] : memref<72x256xf32, #tpu.memory_space<vmem>>, vector<8x256xf32>
    tpu.vector_store %arg9[%c56, %c0_61], %84 {strides = array<i32>} : memref<72x256xf32, #tpu.memory_space<vmem>>, vector<8x256xf32>,
    %c239_i32_62 = arith.constant 239 : i32
    %86 = tpu.dynamic_rotate %49 by %c239_i32_62 dim 1 : vector<8x256xf32>, i32 -> vector<8x256xf32>
    %c8_63 = arith.constant 8 : index
    %c0_64 = arith.constant 0 : index
    %87 = vector.load %arg2[%c8_63, %c0_64] : memref<9x256xf32, #tpu.memory_space<vmem>>, vector<1x256xf32>
    %88 = vector.broadcast %87 : vector<1x256xf32> to vector<8x256xf32>
    %89 = arith.mulf %86, %88 : vector<8x256xf32>
    %c64 = arith.constant 64 : index
    %c0_65 = arith.constant 0 : index
    %90 = vector.load %arg9[%c64, %c0_65] : memref<72x256xf32, #tpu.memory_space<vmem>>, vector<8x256xf32>
    tpu.vector_store %arg9[%c64, %c0_65], %89 {strides = array<i32>} : memref<72x256xf32, #tpu.memory_space<vmem>>, vector<8x256xf32>,
    %c0_66 = arith.constant 0 : index
    %c0_67 = arith.constant 0 : index
    %91 = vector.load %arg5[%c0_66, %c0_67] : memref<16x72xf32, #tpu.memory_space<vmem>>, vector<16x72xf32>
    %c0_68 = arith.constant 0 : index
    %c0_69 = arith.constant 0 : index
    %92 = vector.load %arg9[%c0_68, %c0_69] : memref<72x256xf32, #tpu.memory_space<vmem>>, vector<72x256xf32>
    %cst_70 = arith.constant dense<0.000000e+00> : vector<16x256xf32>
    %93 = tpu.matmul %91, %92, %cst_70 {dimension_numbers = #tpu.dot_dimension_numbers<[1], [0], [0], [1], [0, 0, 1, 1], [], []>} : vector<16x72xf32>, vector<72x256xf32>, vector<16x256xf32> -> vector<16x256xf32>
    %c0_71 = arith.constant 0 : index
    %c0_72 = arith.constant 0 : index
    %94 = vector.load %arg6[%c0_71, %c0_72] : memref<16x1xf32, #tpu.memory_space<vmem>>, vector<16x1xf32>
    %95 = vector.broadcast %94 : vector<16x1xf32> to vector<16x256xf32>
    %96 = arith.addf %93, %95 : vector<16x256xf32>
    %cst_73 = arith.constant 0.000000e+00 : f32
    %97 = vector.broadcast %cst_73 : f32 to vector<16x256xf32>
    %98 = arith.maximumf %96, %97 : vector<16x256xf32>
    %c0_74 = arith.constant 0 : index
    %c0_75 = arith.constant 0 : index
    %99 = vector.load %arg7[%c0_74, %c0_75] : memref<16x256xf32, #tpu.memory_space<vmem>>, vector<16x256xf32>
    tpu.vector_store %arg7[%c0_74, %c0_75], %98 {strides = array<i32>} : memref<16x256xf32, #tpu.memory_space<vmem>>, vector<16x256xf32>,
    return
  }
  func.func @transform_0(%arg0: i32) -> (i32, i32) {
    %c0_i32 = arith.constant 0 : i32
    %c0_i32_0 = arith.constant 0 : i32
    return %c0_i32, %arg0 : i32, i32
  }
  func.func @transform_1(%arg0: i32) -> (i32, i32) {
    %c0_i32 = arith.constant 0 : i32
    %c0_i32_0 = arith.constant 0 : i32
    %c0_i32_1 = arith.constant 0 : i32
    return %c0_i32, %c0_i32_0 : i32, i32
  }
  func.func @transform_2(%arg0: i32) -> (i32, i32) {
    %c0_i32 = arith.constant 0 : i32
    %c0_i32_0 = arith.constant 0 : i32
    %c0_i32_1 = arith.constant 0 : i32
    return %c0_i32, %c0_i32_0 : i32, i32
  }
  func.func @transform_3(%arg0: i32) -> (i32, i32) {
    %c0_i32 = arith.constant 0 : i32
    %c0_i32_0 = arith.constant 0 : i32
    %c0_i32_1 = arith.constant 0 : i32
    return %c0_i32, %c0_i32_0 : i32, i32
  }
  func.func @transform_4(%arg0: i32) -> (i32, i32) {
    %c0_i32 = arith.constant 0 : i32
    %c0_i32_0 = arith.constant 0 : i32
    %c0_i32_1 = arith.constant 0 : i32
    return %c0_i32, %c0_i32_0 : i32, i32
  }
  func.func @transform_5(%arg0: i32) -> (i32, i32) {
    %c0_i32 = arith.constant 0 : i32
    %c0_i32_0 = arith.constant 0 : i32
    %c0_i32_1 = arith.constant 0 : i32
    return %c0_i32, %c0_i32_0 : i32, i32
  }
  func.func @transform_6(%arg0: i32) -> (i32, i32) {
    %c0_i32 = arith.constant 0 : i32
    %c0_i32_0 = arith.constant 0 : i32
    return %c0_i32, %arg0 : i32, i32
  }
}

</mosaic_0001>

<bundles_post_ra>
// kernel: tpu_custom_call.1
= control target key start
LH: loop header
LB: loop body
LE: loop exit
PB: predicated region body
PF: predicated region fallthrough
CT: control target
= control target key end

     0   :  { %11 = vsyncpa [#allocation5], 0  ;;  %s1665_s0 = inlined_call_operand.vmem [shape: f32[4,512], index: 0, kind: input, shape index: {}]   ;;  %s1666_s1 = inlined_call_operand.hbm [shape: f32[9,256], index: 1, kind: input, shape index: {}]   ;;  %s1667_s2 = inlined_call_operand.hbm [shape: f32[8,36], index: 2, kind: input, shape index: {}]   ;;  %s1668_s3 = inlined_call_operand.vmem [shape: f32[8,1], index: 3, kind: input, shape index: {}]   ;;  %s1669_s4 = inlined_call_operand.vmem [shape: f32[16,72], index: 4, kind: input, shape index: {}]   ;;  %s1670_s5 = inlined_call_operand.vmem [shape: f32[16,1], index: 5, kind: input, shape index: {}]   ;;  %s1671_s6 = inlined_call_operand.hbm [shape: f32[16,512], index: 6, kind: output, shape index: {}]  }
   0x1   :  { %12 = vsyncpa [#allocation8], 0 }
   0x2   :  { %13 = vsyncpa [#allocation6], 0 }
   0x3   :  { %15 = vsyncpa [#allocation6 + $0x1], 0  ;;  %s1308_s21 = smov 0   ;;  %s1310_s22 = smov 0  }
   0x4   :  { %s1312_s23 = smov 0   ;;  %s1314_s24 = smov 0  }
   0x5 LB: > { %s1329_s25 = sadd.s32 4294967295, %s1254_s24   ;;  %s1005_s26 = sadd.s32 4294967294, %s1254_s24   ;;  %s1254_s24 = sphi %s1314_s24, %s1689_s24   ;;  %s1250_s23 = sphi %s1312_s23, %s1688_s23   ;;  %s1246_s22 = sphi %s1310_s22, %s1687_s22   ;;  %s1242_s21 = sphi %s1308_s21, %s1686_s21  }
   0x6   : > { %s1333_s27 = sadd.s32 1, %s1254_s24   ;;  %s159_s28 = sadd.s32 1, %s1250_s23 }
   0x7   : > { %s156_s29 = ssub.s32 %s1254_s24, %s1333_s27  ;;  %p169_p0 = scmp.ne.s32.totalorder %s1250_s23, %s1246_s22 }
   0x8   : > { %p157_p1 = scmp.eq.s32.totalorder %s156_s29, 0  ;;  %p170_p2 = scmp.eq.s32.totalorder %s1329_s25, 1 }
   0x9   : > { %p175_p3 = scmp.ne.s32.totalorder %s1246_s22, %s1242_s21  ;;  %p176_p4 = scmp.eq.s32.totalorder %s1005_s26, 1 }
   0xa   : > { %s1344_s30 = scalar_select %p157_p1, %s1250_s23, %s159_s28  }
   0xb   : > { %p1346_p5 = por %p170_p2, %p169_p0  ;;  %p1350_p6 = por %p176_p4, %p175_p3 }
   0xc   : > { %p1006_p7 = scmp.ge.s32.totalorder %s1254_s24, 1  ;;  %p183_p8 = scmp.lt.s32.totalorder %s1254_s24, 3 }
   0xd   : > { %s1675_s7 = scalar_select %p1346_p5, 1, 0 }
   0xe   : > { %s1676_s8 = scalar_select %p1350_p6, 1, 0 }
   0xf   : > { %p1672_p9 = scmp.eq.s32.totalorder %s1329_s25, 0  ;;  %p1357_p10 = pnand %p1006_p7, %p183_p8 }
  0x10   : > { %s1256_s10 = smov [#allocation4]   ;;  %s1257_s13 = smov [#allocation7]  }
  0x11   : > { %s1677_s9 = scalar_select %p1357_p10, 1, 0 }
  0x12   : > { %s195_s11 = sshll.u32 %s1256_s10, 4  ;;  %p1061_p11 = pneg %p1357_p10  ;;  %s196_s11 = int_to_ptr.vmem [resolvable:$true] %s195_s11 }
  0x13   : > { %s209_s14 = sshll.u32 %s1257_s13, 4  ;;  %s1128_s17 = scalar_lea.hbm %s1666_s1, 512  ;;  %s1369_s14 = int_to_ptr.vmem [resolvable:$true] %s209_s14 }
  0x14   : > { %p1365_p12 = pnand %p1672_p9, %p1061_p11  ;;  %p1129_p13 = scmp.ne.s32.totalorder %s1666_s1, %s1128_s17 }
  0x15   : > { %p1135_p3 = scmp.lt.u32.totalorder %s1128_s17, %s1666_s1 }
  0x16   : > { %p1130_p0 = pneg %p1365_p12 }
  0x18   : > { %p1131_p1 = pnand %p1130_p0, %p1129_p13 }
  0x1a   : > { %p1132_p2 = pneg %p1131_p1 }
  0x1c   : > { %p1137_p4 = pnand %p1135_p3, %p1132_p2 }
  0x1e   : > { %1140 = shalt.err (!%p1137_p4)
}
  0x1f   : > { %s1141_s28 = scalar_lea.vmem %s196_s11, 512  ;;  %p1149_p9 = scmp.lt.s32.totalorder %s196_s11, %s196_s11 }
  0x20   : > { %p1142_p7 = scmp.ne.s32.totalorder %s196_s11, %s1141_s28  ;;  %p1150_p6 = scmp.lt.s32.totalorder %s1141_s28, %s1141_s28 }
  0x22   : > { %p1144_p8 = pnand %p1142_p7, %p1130_p0  ;;  %p1151_p5 = por %p1150_p6, %p1149_p9 }
  0x24   : > { %p1145_p11 = pneg %p1144_p8 }
  0x26   : > { %p1152_p10 = pnand %p1151_p5, %p1145_p11 }
  0x28   : > { %1155 = shalt.err (!%p1152_p10)
}
  0x29   : > { %s1258_s29 = smov 256   ;;  %s1259_s10 = smov 16  }
  0x2a   : > { %1064 = dma.hbm_to_vmem [thread:$0]  (!%p1365_p12), %s1666_s1, 512, %s196_s11, [#allocation5], %s1258_s29, %s1258_s29, %s1259_s10  }
  0x2b   : > { %s1156_s18 = scalar_lea.hbm %s1667_s2, 128 }
  0x2c   : > { %p1157_p13 = scmp.ne.s32.totalorder %s1667_s2, %s1156_s18  ;;  %p1163_p9 = scmp.lt.u32.totalorder %s1156_s18, %s1667_s2 }
  0x2e   : > { %p1159_p5 = pnand %p1157_p13, %p1130_p0 }
  0x30   : > { %p1160_p6 = pneg %p1159_p5 }
  0x32   : > { %p1165_p10 = pnand %p1163_p9, %p1160_p6 }
  0x34   : > { %1168 = shalt.err (!%p1165_p10)
}
  0x35   : > { %s1169_s11 = scalar_lea.vmem %s1369_s14, 128  ;;  %p1177_p4 = scmp.lt.s32.totalorder %s1369_s14, %s1369_s14 }
  0x36   : > { %p1170_p1 = scmp.ne.s32.totalorder %s1369_s14, %s1169_s11  ;;  %p1178_p7 = scmp.lt.s32.totalorder %s1169_s11, %s1169_s11 }
  0x38   : > { %p1172_p2 = pnand %p1170_p1, %p1130_p0  ;;  %p1179_p8 = por %p1178_p7, %p1177_p4 }
  0x3a   : > { %p1173_p3 = pneg %p1172_p2 }
  0x3c   : > { %p1180_p11 = pnand %p1179_p8, %p1173_p3 }
  0x3e   : > { %1183 = shalt.err (!%p1180_p11)
}
  0x3f   : > { %1067 = dma.hbm_to_vmem [thread:$0]  (!%p1365_p12), %s1667_s2, 128, %s1369_s14, [#allocation8]  }
  0x40   : > { %p1679_p13 = scmp.ne.s32.totalorder %s1677_s9, 0 }
  0x41   : > { %p1680_p5 = scmp.eq.s32.totalorder (!%p1679_p13), %s1329_s25, 0 }
  0x42   : > { %240 = sbr.rel (%p1679_p13) target bundleno = 849 (0x351), region = 44 }
  0x49   : > { %1229 = dma.done.wait (%p1680_p5), [#allocation5], 512   ;;  %p1681_p0 = pmov %p1680_p5 }
  0x4b   : > { %1231 = vsyncadd (%p1681_p0), [#allocation5], 4294966784  ;;  %p1682_p6 = pmov %p1681_p0 }
  0x4c   : > { %p1683_p9 = pmov %p1681_p0 }
  0x4d   : > { %1233 = dma.done.wait (%p1682_p6), [#allocation8], 128  }
  0x4e   : > { %1235 = vsyncadd (%p1683_p9), [#allocation8], 4294967168  ;;  %s1014_s12 = sshll.u32 %s1329_s25, 1  ;;  %s1260_s16 = smov 1   ;;  %v1268_v2 = vmov 0.0   ;;  %v515_v3 = vld [vmem:[%s1668_s3] sm:$0xff]  ;;  %v289_v5 = vlaneseq }
  0x4f   : > { %p275_p10 = scmp.lt.s32.totalorder %s1014_s12, 3  ;;  %s1261_s17 = smov 16   ;;  %596 = vmatprep.mubr.f32.mxu0 %v1268_v2  ;;  %886 = vmatprep.mubr.f32.mxu1 %v1268_v2  ;;  %v1269_v4 = vmov 0   ;;  %v372_v10 = vld [vmem:[#allocation4 + $0x3] ss:$8 sm:$0x3] }
  0x50   : > { %s1262_s18 = smov 17   ;;  %s1263_s19 = smov 15   ;;  %1125 = vset.pattern.permute.xlu0 %v1269_v4  ;;  %1126 = vset.pattern.permute.xlu1 %v1269_v4  ;;  %v297_v6 = vshrl.u32 %v289_v5, 7  ;;  %v1453_v7 = vand.u32 127, %v289_v5  ;;  %vm525_vm8 = vcmask 1043456   ;;  %vm521_vm9 = vcmask 293888  }
  0x51   : > { %s1691_s12 = smov (!%p275_p10, %s1014_s12), 3  ;;  %s1264_s20 = smov 127   ;;  %v294_v15 = vld [vmem:[#allocation4] ss:$8 sm:$0x3]  ;;  %vm815_vm10 = vcmask 588800  }
  0x52   : > { %s1015_s14 = sshll.u32 %s1691_s12, 2  ;;  %s1265_s26 = smov 112   ;;  %v1455_v8 = vsub.s32 0, %v297_v6  ;;  %v1457_v9 = vsub.s32 1, %v297_v6  ;;  %vm368_vm0 = vcmp.lt.s32.totalorder %v1453_v7, 1  ;;  %vm291_vm1 = vcmp.lt.s32.totalorder %v1453_v7, 17 }
  0x53   : > { %s278_s15 = scalar_lea.vmem %s1665_s0, %s1015_s14  ;;  %s1266_s28 = smov 113   ;;  %v318_v16 = vld [vmem:[#allocation4 + $0x1] ss:$8 sm:$0x3]  ;;  %vm314_vm2 = vcmp.lt.s32.totalorder %v1453_v7, 16  ;;  %vm344_vm3 = vcmp.lt.s32.totalorder %v1453_v7, 15 }
  0x54   : > { %v281_v0 = vld [vmem:[%s278_s15] sm:$0xff]  ;;  %s1267_s11 = smov 111   ;;  %v377_v13 = vrot.slane %v372_v10, %v1455_v8  ;;  %v381_v14 = vrot.slane %v372_v10, %v1457_v9  ;;  %v299_v21 = vrot.slane %v294_v15, %v1455_v8  ;;  %v303_v22 = vrot.slane %v294_v15, %v1457_v9  ;;  %v348_v23 = vld [vmem:[#allocation4 + $0x2] ss:$8 sm:$0x3]  ;;  %s1026_s29 = sshll.u32 %s1329_s25, 8 }
  0x55   : > { %364 = vrot.lane.b32.xlu1 %v281_v0, %s1260_s16  ;;  %394 = vst [vmem:[#allocation2 + $0x20] sm:$0xf] %v281_v0  ;;  %310 = vrot.lane.b32.xlu0 %v281_v0, %s1261_s17  ;;  %v283_v1 = vcombine.high %v281_v0, %v281_v0  ;;  %v323_v26 = vrot.slane %v318_v16, %v1455_v8  ;;  %v404_v42 = vld [vmem:[#allocation4 + $0x5] ss:$8 sm:$0x3]  ;;  %vm400_vm4 = vcmp.lt.s32.totalorder %v1453_v7, 127  ;;  %s1621_s14 = scalar_lea.hbm %s1671_s6, %s1026_s29 }
  0x56   : > { %v327_v27 = vrot.slane %v318_v16, %v1457_v9  ;;  %v353_v32 = vrot.slane %v348_v23, %v1455_v8  ;;  %v357_v33 = vrot.slane %v348_v23, %v1457_v9  ;;  %v409_v51 = vrot.slane %v404_v42, %v1455_v8  ;;  %v458_v53 = vld [vmem:[#allocation4 + $0x7] ss:$8 sm:$0x3]  ;;  %v434_v62 = vld [vmem:[#allocation4 + $0x6] ss:$8 sm:$0x3] }
  0x57   : > { %395 = vst [vmem:[#allocation2 + $0x28] sm:$0xf] %v283_v1  ;;  %v413_v52 = vrot.slane %v404_v42, %v1457_v9  ;;  %vm454_vm5 = vcmp.lt.s32.totalorder %v1453_v7, 112  ;;  %v463_v60 = vrot.slane %v458_v53, %v1455_v8  ;;  %v467_v61 = vrot.slane %v458_v53, %v1457_v9  ;;  %v804_v53 = vld [vmem:[%s1670_s5 + $0x8] sm:$0xff]  ;;  %p1684_p1 = scmp.ne.s32.totalorder %s1675_s7, 0  ;;  %s1270_s9 = smov [#allocation9]  }
  0x58   : > { %vm430_vm6 = vcmp.lt.s32.totalorder %v1453_v7, 113  ;;  %vm484_vm7 = vcmp.lt.s32.totalorder %v1453_v7, 111  ;;  %v784_v7 = vld [vmem:[%s1669_s4 + $0x8] sm:$0xff]  ;;  %s1188_s15 = sshll.u32 %s1270_s9, 4  ;;  %s1189_s15 = int_to_ptr.vmem [resolvable:$false] %s1188_s15 }
  0x59   : > { %285 = vrot.lane.b32.xlu0 %v281_v0, %s1262_s18  ;;  %366 = vrot.lane.b32.xlu1 %v283_v1, %s1260_s16 }
  0x5d   : > { %287 = vrot.lane.b32.xlu1 %v283_v1, %s1262_s18  ;;  %312 = vrot.lane.b32.xlu0 %v283_v1, %s1261_s17 }
  0x61   : > { %342 = vrot.lane.b32.xlu1 %v283_v1, %s1263_s19  ;;  %340 = vrot.lane.b32.xlu0 %v281_v0, %s1263_s19 }
  0x65   : > { %398 = vrot.lane.b32.xlu1 %v283_v1, %s1264_s20  ;;  %396 = vrot.lane.b32.xlu0 %v281_v0, %s1264_s20 }
  0x69   : > { %452 = vrot.lane.b32.xlu1 %v283_v1, %s1265_s26  ;;  %450 = vrot.lane.b32.xlu0 %v281_v0, %s1265_s26 }
  0x6d   : > { %428 = vrot.lane.b32.xlu1 %v283_v1, %s1266_s28  ;;  %426 = vrot.lane.b32.xlu0 %v281_v0, %s1266_s28 }
  0x71   : > { %482 = vrot.lane.b32.xlu1 %v283_v1, %s1267_s11  ;;  %480 = vrot.lane.b32.xlu0 %v281_v0, %s1267_s11 }
  0x75   : > { %518 = vperm.xlu0 %1125, %v515_v3  }
  0xc7   : > { %v365_v11 = vpop.permute.xlu1 %364  ;;  %v311_v12 = vpop.permute.xlu0 %310 }
  0xcb   : > { %v286_v17 = vpop.permute.xlu0 %285  ;;  %v367_v18 = vpop.permute.xlu1 %366 }
  0xcc   : > { %v369_v19 = vsel %vm368_vm0, %v365_v11, %v367_v18  ;;  %v370_v20 = vsel %vm368_vm0, %v367_v18, %v365_v11  ;;  %v439_v11 = vrot.slane %v434_v62, %v1455_v8 }
  0xcd   : > { %v384_v24 = vmul.f32 %v377_v13, %v370_v20  ;;  %v385_v25 = vmul.f32 %v381_v14, %v369_v19  ;;  %v488_v14 = vld [vmem:[#allocation4 + $0x10] ss:$8 sm:$0x3] }
  0xcf   : > { %v388_v28 = vrot.slane %v384_v24, 4  ;;  %v389_v29 = vrot.slane %v385_v25, 4  ;;  %v288_v30 = vpop.permute.xlu1 %287  ;;  %v313_v31 = vpop.permute.xlu0 %312 }
  0xd0   : > { %v292_v34 = vsel %vm291_vm1, %v286_v17, %v288_v30  ;;  %v293_v35 = vsel %vm291_vm1, %v288_v30, %v286_v17  ;;  %v315_v36 = vsel %vm314_vm2, %v311_v12, %v313_v31  ;;  %v316_v37 = vsel %vm314_vm2, %v313_v31, %v311_v12 }
  0xd1   : > { %392 = vst [vmem:[#allocation2 + $0x10] sm:$0xf0] %v388_v28  ;;  %393 = vst [vmem:[#allocation2 + $0x18] sm:$0xf0] %v389_v29  ;;  %v306_v38 = vmul.f32 %v299_v21, %v293_v35  ;;  %v307_v39 = vmul.f32 %v303_v22, %v292_v34  ;;  %v330_v40 = vmul.f32 %v323_v26, %v316_v37 }
  0xd2   : > { %v331_v41 = vmul.f32 %v327_v27, %v315_v36  ;;  %v443_v12 = vrot.slane %v434_v62, %v1457_v9  ;;  %v493_v28 = vrot.slane %v488_v14, %v1455_v8  ;;  %v497_v29 = vrot.slane %v488_v14, %v1457_v9  ;;  %v655_v14 = vld [vmem:[#allocation4 + $0x2] ss:$8 sm:$0x3] }
  0xd3   : > { %308 = vst [vmem:[#allocation2] sm:$0xf] %v306_v38  ;;  %309 = vst [vmem:[#allocation2 + $0x8] sm:$0xf] %v307_v39  ;;  %v334_v43 = vrot.slane %v330_v40, 4  ;;  %v343_v45 = vpop.permute.xlu1 %342  ;;  %v341_v46 = vpop.permute.xlu0 %340 }
  0xd4   : > { %v335_v44 = vrot.slane %v331_v41, 4  ;;  %v345_v47 = vsel %vm344_vm3, %v341_v46, %v343_v45  ;;  %v346_v48 = vsel %vm344_vm3, %v343_v45, %v341_v46 }
  0xd5   : > { %338 = vst [vmem:[#allocation2] sm:$0xf0] %v334_v43  ;;  %v360_v49 = vmul.f32 %v353_v32, %v346_v48  ;;  %v361_v50 = vmul.f32 %v357_v33, %v345_v47 }
  0xd6   : > { %339 = vst [vmem:[#allocation2 + $0x8] sm:$0xf0] %v335_v44  ;;  %v504_v44 = vld [vmem:[#allocation7] sm:$0xff] }
  0xd7   : > { %362 = vst [vmem:[#allocation2 + $0x10] sm:$0xf] %v360_v49  ;;  %363 = vst [vmem:[#allocation2 + $0x18] sm:$0xf] %v361_v50  ;;  %v399_v54 = vpop.permute.xlu1 %398  ;;  %v397_v55 = vpop.permute.xlu0 %396 }
  0xd8   : > { %v401_v56 = vsel %vm400_vm4, %v397_v55, %v399_v54  ;;  %v402_v57 = vsel %vm400_vm4, %v399_v54, %v397_v55 }
  0xd9   : > { %v416_v58 = vmul.f32 %v409_v51, %v401_v56  ;;  %v417_v59 = vmul.f32 %v413_v52, %v402_v57  ;;  %v803_v52 = vld [vmem:[%s1670_s5] sm:$0xff]  ;;  %v611_v56 = vld [vmem:[#allocation4] ss:$8 sm:$0x3] }
  0xda   : > { %v633_v57 = vld [vmem:[#allocation4 + $0x1] ss:$8 sm:$0x3]  ;;  %v620_v62 = vrot.slane %v611_v56, %v1457_v9 }
  0xdb   : > { %v420_v63 = vrot.slane %v416_v58, 4  ;;  %v421_v0 = vrot.slane %v417_v59, 4  ;;  %v453_v1 = vpop.permute.xlu1 %452  ;;  %v451_v3 = vpop.permute.xlu0 %450 }
  0xdc   : > { %v455_v4 = vsel %vm454_vm5, %v451_v3, %v453_v1  ;;  %v456_v5 = vsel %vm454_vm5, %v453_v1, %v451_v3  ;;  %v505_v16 = vld [vmem:[#allocation2] sm:$0xff] }
  0xdd   : > { %424 = vst [vmem:[#allocation2 + $0x20] sm:$0xf0] %v420_v63  ;;  %425 = vst [vmem:[#allocation2 + $0x28] sm:$0xf0] %v421_v0  ;;  %v470_v6 = vmul.f32 %v463_v60, %v455_v4  ;;  %v471_v10 = vmul.f32 %v467_v61, %v456_v5  ;;  %v506_v13 = vld [vmem:[#allocation2 + $0x8] sm:$0xff]  ;;  %v616_v60 = vrot.slane %v611_v56, %v1455_v8 }
  0xde   : > { %v508_v15 = vld [vmem:[#allocation2 + $0x18] sm:$0xff]  ;;  %v507_v17 = vld [vmem:[#allocation2 + $0x10] sm:$0xff]  ;;  %v638_v61 = vrot.slane %v633_v57, %v1455_v8  ;;  %v642_v63 = vrot.slane %v633_v57, %v1457_v9  ;;  %v767_v56 = vld [vmem:[#allocation4 + $0x10] ss:$8 sm:$0x3] }
  0xdf   : > { %v474_v18 = vrot.slane %v470_v6, 4  ;;  %v475_v19 = vrot.slane %v471_v10, 4  ;;  %v429_v20 = vpop.permute.xlu1 %428  ;;  %v427_v21 = vpop.permute.xlu0 %426  ;;  %v1027_v22 = vpack.c.bf16 %v508_v15, %v506_v13  ;;  %v1029_v23 = vpack.c.bf16 %v507_v17, %v505_v16  ;;  %v677_v15 = vld [vmem:[#allocation4 + $0x3] ss:$8 sm:$0x3] }
  0xe0   : > { %v431_v24 = vsel %vm430_vm6, %v427_v21, %v429_v20  ;;  %v432_v25 = vsel %vm430_vm6, %v429_v20, %v427_v21  ;;  %v660_v20 = vrot.slane %v655_v14, %v1455_v8  ;;  %v664_v21 = vrot.slane %v655_v14, %v1457_v9 }
  0xe1   : > { %478 = vst [vmem:[#allocation2 + $0x30] sm:$0xf0] %v474_v18  ;;  %479 = vst [vmem:[#allocation2 + $0x38] sm:$0xf0] %v475_v19  ;;  %v446_v26 = vmul.f32 %v439_v11, %v431_v24  ;;  %v447_v27 = vmul.f32 %v443_v12, %v432_v25  ;;  %1028 = vmatprep.subr.bf16.mxu0 %v1027_v22  ;;  %v682_v22 = vrot.slane %v677_v15, %v1455_v8 }
  0xe2   : > { %1030 = vmatpush1.bf16.msra.mxu0 %v1029_v23  ;;  %v686_v23 = vrot.slane %v677_v15, %v1457_v9  ;;  %v701_v24 = vld [vmem:[#allocation4 + $0x5] ss:$8 sm:$0x3] }
  0xe3   : > { %448 = vst [vmem:[#allocation2 + $0x30] sm:$0xf] %v446_v26  ;;  %449 = vst [vmem:[#allocation2 + $0x38] sm:$0xf] %v447_v27  ;;  %v483_v30 = vpop.permute.xlu1 %482  ;;  %v481_v31 = vpop.permute.xlu0 %480 }
  0xe4   : > { %v485_v32 = vsel %vm484_vm7, %v481_v31, %v483_v30  ;;  %v486_v33 = vsel %vm484_vm7, %v483_v30, %v481_v31  ;;  %v510_v36 = vld [vmem:[#allocation2 + $0x28] sm:$0xff]  ;;  %v509_v38 = vld [vmem:[#allocation2 + $0x20] sm:$0xff]  ;;  %v706_v30 = vrot.slane %v701_v24, %v1455_v8  ;;  %v710_v31 = vrot.slane %v701_v24, %v1457_v9 }
  0xe5   : > { %v500_v34 = vmul.f32 %v493_v28, %v485_v32  ;;  %v501_v35 = vmul.f32 %v497_v29, %v486_v33 }
  0xe7   : > { %502 = vst [vmem:[#allocation2 + $0x40] sm:$0xf] %v500_v34  ;;  %503 = vst [vmem:[#allocation2 + $0x48] sm:$0xf] %v501_v35 }
  0xea   : > { %v512_v37 = vld [vmem:[#allocation2 + $0x38] sm:$0xff]  ;;  %v511_v39 = vld [vmem:[#allocation2 + $0x30] sm:$0xff] }
  0xeb   : > { %v1031_v40 = vpack.c.bf16 %v512_v37, %v510_v36  ;;  %v1033_v41 = vpack.c.bf16 %v511_v39, %v509_v38 }
  0xed   : > { %1032 = vmatprep.subr.bf16.mxu0 %v1031_v40 }
  0xee   : > { %1034 = vmatpush1.bf16.msra.mxu0 %v1033_v41  ;;  %v514_v42 = vld [vmem:[#allocation2 + $0x48] sm:$0xf]  ;;  %v513_v43 = vld [vmem:[#allocation2 + $0x40] sm:$0xf] }
  0xef   : > { %1016 = vmatprep.subr.msk.mxu0 %vm525_vm8, %v514_v42 }
  0xf2   : > { %1017 = vmatpush1.msk.msra.mxu0 %vm525_vm8, %v513_v43 }
  0xf3   : > { %1018 = vmatmul.mubr.msk.f32.vlgmr.msra.gmra.mrb[0].mxu0 %vm521_vm9, %v504_v44  ;;  %v723_v44 = vld [vmem:[#allocation4 + $0x6] ss:$8 sm:$0x3] }
  0xf4   : > { %v519_v45 = vpop.permute.xlu0 %518 }
 0x1c6   : > { %v598_v46 = vpop.f32.mrb[0].mxu0 }
 0x1c7   : > { %v599_v47 = vadd.f32 %v598_v46, %v519_v45  ;;  %v600_v48 = vpop.f32.mrb[1].mxu0 }
 0x1c8   : > { %v601_v50 = vadd.f32 %v600_v48, %v519_v45  ;;  %v745_v45 = vld [vmem:[#allocation4 + $0x7] ss:$8 sm:$0x3] }
 0x1c9   : > { %v1515_v49 = vmax.f32 %v599_v47, 0.0 }
 0x1ca   : > { %v1521_v51 = vmax.f32 %v601_v50, 0.0 }
 0x1cb   : > { %627 = vrot.lane.b32.xlu0 %v1515_v49, %s1261_s17  ;;  %605 = vrot.lane.b32.xlu1 %v1515_v49, %s1262_s18 }
 0x1cf   : > { %649 = vrot.lane.b32.xlu0 %v1515_v49, %s1263_s19  ;;  %607 = vrot.lane.b32.xlu1 %v1521_v51, %s1262_s18 }
 0x1d3   : > { %671 = vrot.lane.b32.xlu0 %v1515_v49, %s1260_s16  ;;  %629 = vrot.lane.b32.xlu1 %v1521_v51, %s1261_s17 }
 0x1d7   : > { %695 = vrot.lane.b32.xlu0 %v1515_v49, %s1264_s20  ;;  %651 = vrot.lane.b32.xlu1 %v1521_v51, %s1263_s19 }
 0x1db   : > { %717 = vrot.lane.b32.xlu0 %v1515_v49, %s1266_s28  ;;  %673 = vrot.lane.b32.xlu1 %v1521_v51, %s1260_s16  ;;  %s1190_s16 = scalar_lea.vmem %s1189_s15, 1024 }
 0x1df   : > { %739 = vrot.lane.b32.xlu0 %v1515_v49, %s1265_s26  ;;  %697 = vrot.lane.b32.xlu1 %v1521_v51, %s1264_s20  ;;  %s271_s20 = sand.u32 1, %s1246_s22  }
 0x1e0   : > { %s1623_s25 = scalar_lea.sflag [#allocation6], %s271_s20 }
 0x1e3   : > { %761 = vrot.lane.b32.xlu0 %v1515_v49, %s1267_s11  ;;  %719 = vrot.lane.b32.xlu1 %v1521_v51, %s1266_s28 }
 0x1e7   : > { %807 = vperm.xlu0 %1125, %v803_v52   ;;  %741 = vrot.lane.b32.xlu1 %v1521_v51, %s1265_s26  ;;  %v728_v52 = vrot.slane %v723_v44, %v1455_v8  ;;  %s1013_s26 = sshll.u32 %s271_s20, 5 }
 0x1e8   : > { %s273_s28 = scalar_lea.vmem [#allocation9], %s1013_s26 }
 0x1eb   : > { %763 = vrot.lane.b32.xlu1 %v1521_v51, %s1267_s11  ;;  %s921_s11 = sshll.u32 %s273_s28, 4  ;;  %s1616_s11 = int_to_ptr.vmem [resolvable:$true] %s921_s11 }
 0x1ec   : > { %s1184_s13 = scalar_lea.vmem %s1616_s11, 512  ;;  %p1191_p4 = scmp.lt.s32.totalorder %s1616_s11, %s1189_s15 }
 0x1ed   : > { %p1185_p12 = scmp.ne.s32.totalorder %s1616_s11, %s1184_s13  ;;  %p1192_p7 = scmp.lt.s32.totalorder %s1190_s16, %s1184_s13 }
 0x1ef   : > { %812 = vperm.xlu1 %1126, %v804_v53   ;;  %v732_v53 = vrot.slane %v723_v44, %v1457_v9  ;;  %p1186_p2 = pnand %p1185_p12, %p1684_p1  ;;  %p1193_p8 = por %p1192_p7, %p1191_p4 }
 0x1f1   : > { %p1187_p3 = pneg %p1186_p2 }
 0x1f3   : > { %p1194_p11 = pnand %p1193_p8, %p1187_p3 }
 0x23d   : > { %v628_v54 = vpop.permute.xlu0 %627  ;;  %v606_v55 = vpop.permute.xlu1 %605 }
 0x241   : > { %v650_v58 = vpop.permute.xlu0 %649  ;;  %v608_v59 = vpop.permute.xlu1 %607 }
 0x242   : > { %v609_v0 = vsel %vm291_vm1, %v606_v55, %v608_v59  ;;  %v610_v1 = vsel %vm291_vm1, %v608_v59, %v606_v55  ;;  %v754_v55 = vrot.slane %v745_v45, %v1457_v9 }
 0x243   : > { %v623_v10 = vmul.f32 %v616_v60, %v610_v1  ;;  %v624_v12 = vmul.f32 %v620_v62, %v609_v0  ;;  %v776_v60 = vrot.slane %v767_v56, %v1457_v9 }
 0x245   : > { %v672_v3 = vpop.permute.xlu0 %671  ;;  %v630_v4 = vpop.permute.xlu1 %629 }
 0x246   : > { %v631_v5 = vsel %vm314_vm2, %v628_v54, %v630_v4  ;;  %v632_v6 = vsel %vm314_vm2, %v630_v4, %v628_v54  ;;  %v750_v54 = vrot.slane %v745_v45, %v1455_v8 }
 0x247   : > { %v645_v11 = vmul.f32 %v638_v61, %v632_v6  ;;  %v646_v13 = vmul.f32 %v642_v63, %v631_v5  ;;  %v772_v6 = vrot.slane %v767_v56, %v1455_v8 }
 0x249   : > { %v652_v16 = vpop.permute.xlu1 %651  ;;  %v1035_v17 = vpack.c.bf16 %v646_v13, %v624_v12  ;;  %v1037_v18 = vpack.c.bf16 %v645_v11, %v623_v10  ;;  %v696_v19 = vpop.permute.xlu0 %695  ;;  %v783_v13 = vld [vmem:[%s1669_s4] sm:$0xff] }
 0x24a   : > { %v653_v25 = vsel %vm344_vm3, %v650_v58, %v652_v16  ;;  %v654_v26 = vsel %vm344_vm3, %v652_v16, %v650_v58 }
 0x24b   : > { %1036 = vmatprep.subr.bf16.mxu1 %v1035_v17  ;;  %v667_v32 = vmul.f32 %v660_v20, %v654_v26  ;;  %v668_v33 = vmul.f32 %v664_v21, %v653_v25 }
 0x24c   : > { %1038 = vmatpush1.bf16.msra.mxu1 %v1037_v18 }
 0x24d   : > { %v674_v27 = vpop.permute.xlu1 %673  ;;  %v718_v36 = vpop.permute.xlu0 %717 }
 0x24e   : > { %v675_v28 = vsel %vm368_vm0, %v672_v3, %v674_v27  ;;  %v676_v29 = vsel %vm368_vm0, %v674_v27, %v672_v3 }
 0x24f   : > { %v689_v34 = vmul.f32 %v682_v22, %v676_v29  ;;  %v690_v35 = vmul.f32 %v686_v23, %v675_v28 }
 0x251   : > { %v698_v37 = vpop.permute.xlu1 %697  ;;  %v1039_v38 = vpack.c.bf16 %v690_v35, %v668_v33  ;;  %v1041_v39 = vpack.c.bf16 %v689_v34, %v667_v32  ;;  %v740_v50 = vpop.permute.xlu0 %739 }
 0x252   : > { %v699_v40 = vsel %vm400_vm4, %v696_v19, %v698_v37  ;;  %v700_v41 = vsel %vm400_vm4, %v698_v37, %v696_v19 }
 0x253   : > { %v713_v42 = vmul.f32 %v706_v30, %v699_v40  ;;  %v714_v43 = vmul.f32 %v710_v31, %v700_v41  ;;  %1040 = vmatprep.subr.bf16.mxu1 %v1039_v38 }
 0x254   : > { %1042 = vmatpush1.bf16.msra.mxu1 %v1041_v39 }
 0x255   : > { %v720_v46 = vpop.permute.xlu1 %719  ;;  %v1043_v47 = vpack.c.bf16 %v714_v43, %v1521_v51  ;;  %v1045_v48 = vpack.c.bf16 %v713_v42, %v1515_v49  ;;  %v762_v1 = vpop.permute.xlu0 %761 }
 0x256   : > { %v721_v57 = vsel %vm430_vm6, %v718_v36, %v720_v46  ;;  %v722_v58 = vsel %vm430_vm6, %v720_v46, %v718_v36 }
 0x257   : > { %1044 = vmatprep.subr.bf16.mxu1 %v1043_v47  ;;  %v735_v61 = vmul.f32 %v728_v52, %v721_v57  ;;  %v736_v62 = vmul.f32 %v732_v53, %v722_v58 }
 0x258   : > { %1046 = vmatpush1.bf16.msra.mxu1 %v1045_v48 }
 0x259   : > { %v742_v51 = vpop.permute.xlu1 %741 }
 0x25a   : > { %v743_v49 = vsel %vm454_vm5, %v740_v50, %v742_v51  ;;  %v744_v59 = vsel %vm454_vm5, %v742_v51, %v740_v50 }
 0x25b   : > { %v757_v63 = vmul.f32 %v750_v54, %v743_v49  ;;  %v758_v0 = vmul.f32 %v754_v55, %v744_v59 }
 0x25d   : > { %v764_v3 = vpop.permute.xlu1 %763  ;;  %v1047_v4 = vpack.c.bf16 %v758_v0, %v736_v62  ;;  %v1049_v5 = vpack.c.bf16 %v757_v63, %v735_v61 }
 0x25e   : > { %v766_v10 = vsel %vm484_vm7, %v764_v3, %v762_v1  ;;  %v765_v11 = vsel %vm484_vm7, %v762_v1, %v764_v3 }
 0x25f   : > { %v780_v12 = vmul.f32 %v776_v60, %v766_v10  ;;  %1048 = vmatprep.subr.bf16.mxu1 %v1047_v4  ;;  %v779_v9 = vmul.f32 %v772_v6, %v765_v11 }
 0x260   : > { %1050 = vmatpush1.bf16.msra.mxu1 %v1049_v5 }
 0x261   : > { %838 = vmatprep.subr.mxu1 %v780_v12 }
 0x264   : > { %839 = vmatpush1.msra.mxu1 %v779_v9 }
 0x265   : > { %1019 = vmatmul.mubr.msk.f32.vlgmr.msra.gmra.mrb[0].mxu1 %vm815_vm10, %v783_v13 }
 0x266   : > { %892 = vmatprep.mubr.f32.mxu1 %v1268_v2  ;;  %v808_v8 = vpop.permute.xlu0 %807 }
 0x269   : > { %1020 = vmatmul.mubr.msk.f32.gmra.mrb[2].mxu1 %vm815_vm10, %v784_v7 }
 0x26e   : > { %v813_v18 = vpop.permute.xlu1 %812 }
 0x338   : > { %v888_v14 = vpop.f32.mrb[0].mxu1 }
 0x339   : > { %v889_v15 = vadd.f32 %v888_v14, %v808_v8  ;;  %v890_v16 = vpop.f32.mrb[1].mxu1 }
 0x33a   : > { %v891_v17 = vadd.f32 %v890_v16, %v808_v8 }
 0x33b   : > { %v899_v19 = vmax.f32 %v889_v15, 0.0 }
 0x33c   : > { %v900_v20 = vmax.f32 %v891_v17, 0.0  ;;  %v894_v21 = vpop.f32.mrb[2].mxu1 }
 0x33d   : > { %903 = vst [vmem:[%s273_s28] sm:$0xff] %v899_v19  ;;  %v895_v2 = vadd.f32 %v894_v21, %v813_v18  ;;  %v896_v22 = vpop.f32.mrb[3].mxu1 }
 0x33e   : > { %904 = vst [vmem:[%s273_s28 + $0x8] sm:$0xff] %v900_v20  ;;  %v897_v23 = vadd.f32 %v896_v22, %v813_v18 }
 0x33f   : > { %v901_v24 = vmax.f32 %v895_v2, 0.0 }
 0x340   : > { %v902_v25 = vmax.f32 %v897_v23, 0.0 }
 0x341   : > { %905 = vst [vmem:[%s273_s28 + $0x10] sm:$0xff] %v901_v24 }
 0x342   : > { %906 = vst [vmem:[%s273_s28 + $0x18] sm:$0xff] %v902_v25 }
 0x343   : > { %1197 = shalt.err (!%p1194_p11)
}
 0x344   : > { %s1198_s18 = scalar_lea.hbm %s1621_s14, 512  ;;  %s1202_s26 = scalar_lea.hbm %s1671_s6, 1024 }
 0x345   : > { %p1199_p13 = scmp.ne.s32.totalorder %s1621_s14, %s1198_s18  ;;  %p1203_p6 = scmp.lt.u32.totalorder %s1621_s14, %s1671_s6 }
 0x346   : > { %p1204_p9 = scmp.lt.u32.totalorder %s1202_s26, %s1198_s18  ;;  %p1206_p12 = scmp.lt.u32.totalorder %s1198_s18, %s1621_s14 }
 0x347   : > { %p1200_p5 = pnand %p1199_p13, %p1684_p1 }
 0x348   : > { %p1205_p10 = por %p1204_p9, %p1203_p6 }
 0x349   : > { %p1201_p0 = pneg %p1200_p5 }
 0x34a   : > { %p1207_p2 = por %p1206_p12, %p1205_p10 }
 0x34c   : > { %p1208_p3 = pnand %p1207_p2, %p1201_p0 }
 0x34e   : > { %1211 = shalt.err (!%p1208_p3)
}
 0x34f   : > { %s1271_s10 = smov 256   ;;  %s1272_s12 = smov 512  }
 0x350   : > { %1059 = dma.vmem_to_hbm [thread:$0]  (%p1684_p1), %s1616_s11, 512, %s1621_s14, %s1623_s25, %s1271_s10, %s1272_s12, %s1261_s17  }
 0x351 PF: > { %p1076_p4 = scmp.ge.s32.totalorder %s1254_s24, 2  ;;  %s936_s13 = sand.u32 1, %s1242_s21  }
 0x352   : > { %p1685_p7 = scmp.ne.s32.totalorder %s1676_s8, 0  ;;  %s937_s9 = scalar_lea.sflag [#allocation6], %s936_s13 }
 0x354   : > { %p1069_p8 = pnand %p1076_p4, %p1685_p7 }
 0x356   : > { %1237 = dma.done.wait (!%p1069_p8), %s937_s9, 512  }
 0x357   : > { %1239 = vsyncadd (!%p1069_p8), %s937_s9, 4294966784  ;;  %p18_p11 = scmp.ge.s32.totalorder %s1333_s27, 4   ;;  %s1686_s21 = smov %s1246_s22 }
 0x358   : > { %s1687_s22 = smov %s1250_s23  ;;  %s1688_s23 = smov %s1344_s30 }
 0x359   : > { %s1689_s24 = smov %s1333_s27  ;;  %20 = sbr.rel (!%p18_p11) target bundleno = 5 (0x5), region = 95 }
 0x360   :  { %942 = vsyncpa [#allocation5], 1 }
 0x361   :  { %944 = vsyncpa [#allocation5 + $0x1], 1 }
 0x362   :  { %945 = vsyncpa [#allocation8], 1 }
 0x363   :  { %946 = vsyncpa [#allocation6], 1 }
 0x364   :  { %948 = vsyncpa [#allocation6 + $0x1], 1 }

</bundles_post_ra>
